<compile_context>
chip_gen: v7x
topology: tpu7x:2x2x1
jax: 0.10.0
libtpu: 0.0.40
codegen_flags: <defaults>
</compile_context>

<pallas_src>
import functools

import jax
import jax.numpy as jnp
from jax.experimental import pallas as pl
from jax.experimental.pallas import tpu as pltpu


# ----------------------------------------------------------------------------
# Helpers
# ----------------------------------------------------------------------------
def _round_up(x: int, m: int) -> int:
    return (x + m - 1) // m * m


def _probe_copy_kernel(w_ref, o_ref):
    o_ref[...] = w_ref[...] + 1.0


@functools.lru_cache(maxsize=1)
def _weight_buffer_count() -> int:
    """1 if single-buffered resident blocks (pl.Buffered(1)) compile on this
    JAX/Mosaic build (halves resident-weight VMEM), else 2 (default)."""
    try:
        probe = pl.pallas_call(
            _probe_copy_kernel,
            out_shape=jax.ShapeDtypeStruct((16, 128), jnp.float32),
            grid=(2,),
            in_specs=[pl.BlockSpec((8, 128), lambda i: (0, 0),
                                   pipeline_mode=pl.Buffered(1))],
            out_specs=pl.BlockSpec((8, 128), lambda i: (i, 0)),
        )
        jax.jit(probe).lower(jax.ShapeDtypeStruct((8, 128), jnp.float32)).compile()
        return 1
    except Exception:
        return 2


def _resident_spec(shape, buffer_count):
    # Constant block index across the batch grid -> fetched once, stays in VMEM.
    n = len(shape)
    index_map = lambda i, _n=n: (0,) * _n
    if buffer_count == 1:
        return pl.BlockSpec(shape, index_map, pipeline_mode=pl.Buffered(1))
    return pl.BlockSpec(shape, index_map)


def _vmem_capacity_bytes() -> int:
    try:
        return int(pltpu.get_tpu_info().vmem_capacity_bytes)
    except Exception:
        return 64 << 20          # conservative (v7x) if the query is unavailable


# ----------------------------------------------------------------------------
# Fused AE forward kernel
# ----------------------------------------------------------------------------
def _ae_fused_kernel(*refs, n_hidden, final_activation, compute_dtype,
                     input_dim, pad_input):
    x_ref = refs[0]
    if pad_input:
        o_ref, xpad_ref = refs[-2], refs[-1]
        wb_refs = refs[1:-2]
    else:
        o_ref, xpad_ref = refs[-1], None
        wb_refs = refs[1:-1]

    it = iter(wb_refs)
    eiw, eib = next(it), next(it)
    ehw, ehb = (next(it), next(it)) if n_hidden > 0 else (None, None)
    eow, eob = next(it), next(it)
    diw, dib = next(it), next(it)
    dhw, dhb = (next(it), next(it)) if n_hidden > 0 else (None, None)
    dow, dob = next(it), next(it)

    def layer(h, w, b, act):
        # bf16 MXU matmul with f32 accumulation; f32 bias/activation epilogue.
        # (On v6e/v7x ReLU-after-cast would halve VALU traffic, but v5e has no
        #  bf16 VPU, so keep the portable f32 order.)
        y = jnp.dot(h, w, preferred_element_type=jnp.float32)
        y = y + b                                   # biases stay f32
        if act == "relu":
            y = jnp.maximum(y, 0.0)
        elif act == "sigmoid":
            y = jax.nn.sigmoid(y)
        elif act == "tanh":
            y = jnp.tanh(y)
        elif act != "none":
            raise ValueError(f"unknown activation {act!r}")
        return y

    # In-kernel zero-extend + bf16 cast of the input tile (avoids a wrapper-side
    # pad/cast pass over the whole batch in HBM).
    if pad_input:
        xpad_ref[...] = jnp.zeros_like(xpad_ref)
        xpad_ref[:, :input_dim] = x_ref[...]
        h = xpad_ref[...].astype(compute_dtype)
    else:
        h = x_ref[...].astype(compute_dtype)

    h = layer(h, eiw[...], eib[...], "relu").astype(compute_dtype)
    for l in range(n_hidden):            # static unroll over stacked hidden layers
        h = layer(h, ehw[l], ehb[l], "relu").astype(compute_dtype)
    h = layer(h, eow[...], eob[...], "relu").astype(compute_dtype)
    h = layer(h, diw[...], dib[...], "relu").astype(compute_dtype)
    for l in range(n_hidden):
        h = layer(h, dhw[l], dhb[l], "relu").astype(compute_dtype)
    y = layer(h, dow[...], dob[...], final_activation)       # (tb, din_p) f32
    # Write the UNPADDED output directly (no post-kernel slice copy in HBM).
    o_ref[...] = y[:, :input_dim].astype(o_ref.dtype)


# ----------------------------------------------------------------------------
# One-time weight preparation (pad to 128 multiples, cast, stack)
# ----------------------------------------------------------------------------
def prepare_ae_params(params, *, compute_dtype=jnp.bfloat16):
    """Pad/cast/stack the AE weights ONCE per parameter set.

    Re-running this on every forward call would stream ~2x the weight bytes
    through HBM before the kernel even starts, which dominates at small batch.
    """
    input_dim, hidden_dim = params["enc_in"][0].shape
    latent_dim = params["enc_out"][0].shape[1]
    n_hidden = len(params["enc_hidden"])
    assert len(params["dec_hidden"]) == n_hidden
    din_p, h_p, l_p = (_round_up(d, 128) for d in (input_dim, hidden_dim, latent_dim))

    def pad_w(w, rp, cp):
        r, c = w.shape
        return jnp.pad(w, ((0, rp - r), (0, cp - c))).astype(compute_dtype)

    def pad_b(b, cp):                               # biases stay f32
        (c,) = b.shape
        return jnp.pad(b, (0, cp - c)).reshape(1, cp).astype(jnp.float32)

    prepared = {
        "enc_in_w": pad_w(params["enc_in"][0], din_p, h_p),
        "enc_in_b": pad_b(params["enc_in"][1], h_p),
        "enc_out_w": pad_w(params["enc_out"][0], h_p, l_p),
        "enc_out_b": pad_b(params["enc_out"][1], l_p),
        "dec_in_w": pad_w(params["dec_in"][0], l_p, h_p),
        "dec_in_b": pad_b(params["dec_in"][1], h_p),
        "dec_out_w": pad_w(params["dec_out"][0], h_p, din_p),
        "dec_out_b": pad_b(params["dec_out"][1], din_p),
    }
    if n_hidden > 0:
        prepared["enc_hidden_w"] = jnp.stack(
            [pad_w(w, h_p, h_p) for w, _ in params["enc_hidden"]])
        prepared["enc_hidden_b"] = jnp.stack(
            [pad_b(b, h_p) for _, b in params["enc_hidden"]])
        prepared["dec_hidden_w"] = jnp.stack(
            [pad_w(w, h_p, h_p) for w, _ in params["dec_hidden"]])
        prepared["dec_hidden_b"] = jnp.stack(
            [pad_b(b, h_p) for _, b in params["dec_hidden"]])
    _weight_buffer_count()    # warm the Buffered(1) probe outside any outer jit
    return prepared


# ----------------------------------------------------------------------------
# Wrapper: batch tiling, specs, VMEM budget, single pallas_call
# ----------------------------------------------------------------------------
def ae_forward(prepared, x, *, final_activation: str = "sigmoid", tile_b: int = 256):
    batch, input_dim = x.shape
    din_p, h_p = prepared["enc_in_w"].shape
    l_p = prepared["enc_out_w"].shape[1]
    n_hidden = prepared["enc_hidden_w"].shape[0] if "enc_hidden_w" in prepared else 0
    compute_dtype = prepared["enc_in_w"].dtype
    if din_p != _round_up(input_dim, 128):
        raise ValueError("x feature dim does not match the prepared parameters")
    pad_input = din_p != input_dim

    # ---- batch tiling --------------------------------------------------------
    tile_b = max(16, _round_up(tile_b, 16))
    if batch > tile_b:
        tb = tile_b
    elif batch >= 32:
        # >=2 grid steps so both v7x TensorCores get work; 16-row aligned tiles.
        tb = max(16, _round_up(-(-batch // 2), 16))
    else:
        tb = batch                       # one full-batch block (always layout-legal)
    grid_steps = -(-batch // tb)

    wbuf = _weight_buffer_count()

    # ---- inputs + specs (order must match the kernel's unpacking) -------------
    names = ["enc_in_w", "enc_in_b"]
    if n_hidden > 0:
        names += ["enc_hidden_w", "enc_hidden_b"]
    names += ["enc_out_w", "enc_out_b", "dec_in_w", "dec_in_b"]
    if n_hidden > 0:
        names += ["dec_hidden_w", "dec_hidden_b"]
    names += ["dec_out_w", "dec_out_b"]

    inputs = [x]
    in_specs = [pl.BlockSpec((tb, input_dim), lambda i: (i, 0))]
    for nm in names:
        arr = prepared[nm]
        inputs.append(arr)
        in_specs.append(_resident_spec(arr.shape, wbuf))

    scratch_shapes = []
    if pad_input:
        scratch_shapes.append(pltpu.VMEM((tb, din_p), jnp.float32))

    # ---- VMEM budget (generation-aware) + cost estimate ------------------------
    w_bytes = sum(int(prepared[nm].size) * prepared[nm].dtype.itemsize for nm in names)
    io_tile_bytes = 2 * 2 * tb * input_dim * x.dtype.itemsize     # x + out tiles, 2-buffered
    act_bytes = 4 * tb * max(din_p, h_p, l_p) * 4                 # live f32 act + bf16 copies + slack
    pad_bytes = tb * din_p * 4 if pad_input else 0
    vmem_est = wbuf * w_bytes + io_tile_bytes + act_bytes + pad_bytes + (4 << 20)
    vmem_budget = _vmem_capacity_bytes() - (16 << 20)             # headroom for Mosaic scratch
    # TODO(synk): if wbuf*w_bytes exceeds vmem_budget (very wide hidden dims), add an
    # inner "arbitrary" grid axis streaming output-feature tiles of the hidden-layer
    # weights instead of relying on full residency.
    vmem_limit = int(min(max(vmem_est, 32 << 20), vmem_budget))

    flops = 2 * grid_steps * tb * (din_p * h_p + 2 * n_hidden * h_p * h_p
                                   + h_p * l_p + l_p * h_p + h_p * din_p)
    transc = batch * input_dim if final_activation in ("sigmoid", "tanh") else 0
    bytes_accessed = w_bytes + 2 * batch * input_dim * x.dtype.itemsize
    cost = pl.CostEstimate(flops=int(flops), transcendentals=int(transc),
                           bytes_accessed=int(bytes_accessed))

    kernel = functools.partial(
        _ae_fused_kernel, n_hidden=n_hidden, final_activation=final_activation,
        compute_dtype=compute_dtype, input_dim=input_dim, pad_input=pad_input)

    return pl.pallas_call(
        kernel,
        out_shape=jax.ShapeDtypeStruct((batch, input_dim), x.dtype),
        grid=(grid_steps,),
        in_specs=in_specs,
        out_specs=pl.BlockSpec((tb, input_dim), lambda i: (i, 0)),
        scratch_shapes=scratch_shapes,
        compiler_params=pltpu.CompilerParams(
            dimension_semantics=("parallel",),
            vmem_limit_bytes=vmem_limit),
        cost_estimate=cost,
    )(*inputs)


# ----------------------------------------------------------------------------
# AE parameters (mirrors the PyTorch module; weights stored (in_f, out_f))
# ----------------------------------------------------------------------------
def init_linear(key, in_f, out_f, dtype=jnp.float32):
    kw, kb = jax.random.split(key)
    bound = 1.0 / jnp.sqrt(jnp.asarray(in_f, dtype))
    w = jax.random.uniform(kw, (in_f, out_f), dtype, -bound, bound)
    b = jax.random.uniform(kb, (out_f,), dtype, -bound, bound)
    return w, b


def init_ae_params(key, input_dim, hidden_dim, latent_dim, n_hidden_layers):
    keys = jax.random.split(key, 4 + 2 * n_hidden_layers)
    it = iter(keys)
    return {
        "enc_in": init_linear(next(it), input_dim, hidden_dim),
        "enc_hidden": [init_linear(next(it), hidden_dim, hidden_dim)
                       for _ in range(n_hidden_layers)],
        "enc_out": init_linear(next(it), hidden_dim, latent_dim),
        "dec_in": init_linear(next(it), latent_dim, hidden_dim),
        "dec_hidden": [init_linear(next(it), hidden_dim, hidden_dim)
                       for _ in range(n_hidden_layers)],
        "dec_out": init_linear(next(it), hidden_dim, input_dim),
    }


# ----------------------------------------------------------------------------
# Pure-JAX references (f32, and bf16-matmul to mirror the kernel's numerics)
# ----------------------------------------------------------------------------
def ae_forward_ref(params, x, final_activation: str = "sigmoid", compute_dtype=None):
    def lin(h, wb, act):
        w, b = wb
        if compute_dtype is not None:
            y = jnp.dot(h.astype(compute_dtype), w.astype(compute_dtype),
                        preferred_element_type=jnp.float32)
            y = y + b.astype(jnp.float32)
        else:
            y = h @ w + b
        if act == "relu":
            return jnp.maximum(y, 0.0)
        if act == "sigmoid":
            return jax.nn.sigmoid(y)
        if act == "tanh":
            return jnp.tanh(y)
        return y

    h = lin(x, params["enc_in"], "relu")
    for wb in params["enc_hidden"]:
        h = lin(h, wb, "relu")
    h = lin(h, params["enc_out"], "relu")
    h = lin(h, params["dec_in"], "relu")
    for wb in params["dec_hidden"]:
        h = lin(h, wb, "relu")
    return lin(h, params["dec_out"], final_activation)


if __name__ == "__main__":
    batch = 8
    input_dim = 64
    hidden_dim = 32
    latent_dim = 16
    n_hidden_layers = 2

    key = jax.random.PRNGKey(0)
    kp, kx = jax.random.split(key)
    params = init_ae_params(kp, input_dim, hidden_dim, latent_dim, n_hidden_layers)
    x = jax.random.normal(kx, (batch, input_dim), jnp.float32)

    prepared = prepare_ae_params(params)              # pad/cast/stack weights ONCE
    fwd = jax.jit(functools.partial(ae_forward, final_activation="sigmoid"))
    y = jax.block_until_ready(fwd(prepared, x))

    y_ref16 = jax.block_until_ready(
        ae_forward_ref(params, x, compute_dtype=jnp.bfloat16))
    y_ref32 = jax.block_until_ready(ae_forward_ref(params, x))

    assert y.shape == (batch, input_dim)
    assert jnp.allclose(y, y_ref16, atol=1e-2, rtol=1e-2), \
        float(jnp.max(jnp.abs(y - y_ref16)))
    assert jnp.allclose(y, y_ref32, atol=3e-2, rtol=3e-2), \
        float(jnp.max(jnp.abs(y - y_ref32)))
    print("KERNEL_OK")
</pallas_src>

<mosaic_0001>
module attributes {stable_mosaic.version = 11 : i64} {
  func.func @_ae_fused_kernel(%arg0: i32, %arg1: memref<8x64xf32, #tpu.memory_space<vmem>>, %arg2: memref<128x128xbf16, #tpu.memory_space<vmem>>, %arg3: memref<1x128xf32, #tpu.memory_space<vmem>>, %arg4: memref<2x128x128xbf16, #tpu.memory_space<vmem>>, %arg5: memref<2x1x128xf32, #tpu.memory_space<vmem>>, %arg6: memref<128x128xbf16, #tpu.memory_space<vmem>>, %arg7: memref<1x128xf32, #tpu.memory_space<vmem>>, %arg8: memref<128x128xbf16, #tpu.memory_space<vmem>>, %arg9: memref<1x128xf32, #tpu.memory_space<vmem>>, %arg10: memref<2x128x128xbf16, #tpu.memory_space<vmem>>, %arg11: memref<2x1x128xf32, #tpu.memory_space<vmem>>, %arg12: memref<128x128xbf16, #tpu.memory_space<vmem>>, %arg13: memref<1x128xf32, #tpu.memory_space<vmem>>, %arg14: memref<8x64xf32, #tpu.memory_space<vmem>>, %arg15: memref<8x128xf32, #tpu.memory_space<vmem>>) attributes {dimension_semantics = [#tpu.dimension_semantics<parallel>], iteration_bounds = array<i64: 1>, scalar_prefetch = 0 : i64, scratch_operands = 1 : i64, tpu.core_type = #tpu.core_type<tc>, window_params = [{transform_indices = @transform_0, window_bounds = array<i64: 8, 64>}, {pipeline_mode = #tpu.pipeline_mode<synchronous>, transform_indices = @transform_1, window_bounds = array<i64: 128, 128>}, {pipeline_mode = #tpu.pipeline_mode<synchronous>, transform_indices = @transform_2, window_bounds = array<i64: 1, 128>}, {pipeline_mode = #tpu.pipeline_mode<synchronous>, transform_indices = @transform_3, window_bounds = array<i64: 2, 128, 128>}, {pipeline_mode = #tpu.pipeline_mode<synchronous>, transform_indices = @transform_4, window_bounds = array<i64: 2, 1, 128>}, {pipeline_mode = #tpu.pipeline_mode<synchronous>, transform_indices = @transform_5, window_bounds = array<i64: 128, 128>}, {pipeline_mode = #tpu.pipeline_mode<synchronous>, transform_indices = @transform_6, window_bounds = array<i64: 1, 128>}, {pipeline_mode = #tpu.pipeline_mode<synchronous>, transform_indices = @transform_7, window_bounds = array<i64: 128, 128>}, {pipeline_mode = #tpu.pipeline_mode<synchronous>, transform_indices = @transform_8, window_bounds = array<i64: 1, 128>}, {pipeline_mode = #tpu.pipeline_mode<synchronous>, transform_indices = @transform_9, window_bounds = array<i64: 2, 128, 128>}, {pipeline_mode = #tpu.pipeline_mode<synchronous>, transform_indices = @transform_10, window_bounds = array<i64: 2, 1, 128>}, {pipeline_mode = #tpu.pipeline_mode<synchronous>, transform_indices = @transform_11, window_bounds = array<i64: 128, 128>}, {pipeline_mode = #tpu.pipeline_mode<synchronous>, transform_indices = @transform_12, window_bounds = array<i64: 1, 128>}, {transform_indices = @transform_13, window_bounds = array<i64: 8, 64>}]} {
    %cst = arith.constant 0.000000e+00 : f32
    %0 = vector.broadcast %cst : f32 to vector<8x128xf32>
    %c0 = arith.constant 0 : index
    %c0_0 = arith.constant 0 : index
    %1 = vector.load %arg15[%c0, %c0_0] : memref<8x128xf32, #tpu.memory_space<vmem>>, vector<8x128xf32>
    tpu.vector_store %arg15[%c0, %c0_0], %0 {strides = array<i32>} : memref<8x128xf32, #tpu.memory_space<vmem>>, vector<8x128xf32>,
    %c0_1 = arith.constant 0 : index
    %c0_2 = arith.constant 0 : index
    %2 = vector.load %arg1[%c0_1, %c0_2] : memref<8x64xf32, #tpu.memory_space<vmem>>, vector<8x64xf32>
    %c0_3 = arith.constant 0 : index
    %c0_4 = arith.constant 0 : index
    %3 = vector.load %arg15[%c0_3, %c0_4] : memref<8x128xf32, #tpu.memory_space<vmem>>, vector<8x64xf32>
    tpu.vector_store %arg15[%c0_3, %c0_4], %2 {strides = array<i32>} : memref<8x128xf32, #tpu.memory_space<vmem>>, vector<8x64xf32>,
    %c0_5 = arith.constant 0 : index
    %c0_6 = arith.constant 0 : index
    %4 = vector.load %arg15[%c0_5, %c0_6] : memref<8x128xf32, #tpu.memory_space<vmem>>, vector<8x128xf32>
    %5 = arith.truncf %4 : vector<8x128xf32> to vector<8x128xbf16>
    %c0_7 = arith.constant 0 : index
    %c0_8 = arith.constant 0 : index
    %6 = vector.load %arg2[%c0_7, %c0_8] : memref<128x128xbf16, #tpu.memory_space<vmem>>, vector<128x128xbf16>
    %c0_9 = arith.constant 0 : index
    %c0_10 = arith.constant 0 : index
    %7 = vector.load %arg3[%c0_9, %c0_10] : memref<1x128xf32, #tpu.memory_space<vmem>>, vector<1x128xf32>
    %cst_11 = arith.constant dense<0.000000e+00> : vector<8x128xf32>
    %8 = tpu.matmul %5, %6, %cst_11 {dimension_numbers = #tpu.dot_dimension_numbers<[1], [0], [0], [1], [0, 0, 1, 1], [], []>} : vector<8x128xbf16>, vector<128x128xbf16>, vector<8x128xf32> -> vector<8x128xf32>
    %9 = vector.broadcast %7 : vector<1x128xf32> to vector<8x128xf32>
    %10 = arith.addf %8, %9 : vector<8x128xf32>
    %cst_12 = arith.constant 0.000000e+00 : f32
    %11 = vector.broadcast %cst_12 : f32 to vector<8x128xf32>
    %12 = arith.maximumf %10, %11 : vector<8x128xf32>
    %13 = arith.truncf %12 : vector<8x128xf32> to vector<8x128xbf16>
    %c0_13 = arith.constant 0 : index
    %c0_14 = arith.constant 0 : index
    %c0_15 = arith.constant 0 : index
    %14 = vector.load %arg4[%c0_13, %c0_14, %c0_15] : memref<2x128x128xbf16, #tpu.memory_space<vmem>>, vector<1x128x128xbf16>
    %15 = vector.shape_cast %14 : vector<1x128x128xbf16> to vector<128x128xbf16>
    %c0_16 = arith.constant 0 : index
    %c0_17 = arith.constant 0 : index
    %c0_18 = arith.constant 0 : index
    %16 = vector.load %arg5[%c0_16, %c0_17, %c0_18] : memref<2x1x128xf32, #tpu.memory_space<vmem>>, vector<1x1x128xf32>
    %17 = vector.shape_cast %16 : vector<1x1x128xf32> to vector<1x128xf32>
    %cst_19 = arith.constant dense<0.000000e+00> : vector<8x128xf32>
    %18 = tpu.matmul %13, %15, %cst_19 {dimension_numbers = #tpu.dot_dimension_numbers<[1], [0], [0], [1], [0, 0, 1, 1], [], []>} : vector<8x128xbf16>, vector<128x128xbf16>, vector<8x128xf32> -> vector<8x128xf32>
    %19 = vector.broadcast %17 : vector<1x128xf32> to vector<8x128xf32>
    %20 = arith.addf %18, %19 : vector<8x128xf32>
    %cst_20 = arith.constant 0.000000e+00 : f32
    %21 = vector.broadcast %cst_20 : f32 to vector<8x128xf32>
    %22 = arith.maximumf %20, %21 : vector<8x128xf32>
    %23 = arith.truncf %22 : vector<8x128xf32> to vector<8x128xbf16>
    %c1 = arith.constant 1 : index
    %c0_21 = arith.constant 0 : index
    %c0_22 = arith.constant 0 : index
    %24 = vector.load %arg4[%c1, %c0_21, %c0_22] : memref<2x128x128xbf16, #tpu.memory_space<vmem>>, vector<1x128x128xbf16>
    %25 = vector.shape_cast %24 : vector<1x128x128xbf16> to vector<128x128xbf16>
    %c1_23 = arith.constant 1 : index
    %c0_24 = arith.constant 0 : index
    %c0_25 = arith.constant 0 : index
    %26 = vector.load %arg5[%c1_23, %c0_24, %c0_25] : memref<2x1x128xf32, #tpu.memory_space<vmem>>, vector<1x1x128xf32>
    %27 = vector.shape_cast %26 : vector<1x1x128xf32> to vector<1x128xf32>
    %cst_26 = arith.constant dense<0.000000e+00> : vector<8x128xf32>
    %28 = tpu.matmul %23, %25, %cst_26 {dimension_numbers = #tpu.dot_dimension_numbers<[1], [0], [0], [1], [0, 0, 1, 1], [], []>} : vector<8x128xbf16>, vector<128x128xbf16>, vector<8x128xf32> -> vector<8x128xf32>
    %29 = vector.broadcast %27 : vector<1x128xf32> to vector<8x128xf32>
    %30 = arith.addf %28, %29 : vector<8x128xf32>
    %cst_27 = arith.constant 0.000000e+00 : f32
    %31 = vector.broadcast %cst_27 : f32 to vector<8x128xf32>
    %32 = arith.maximumf %30, %31 : vector<8x128xf32>
    %33 = arith.truncf %32 : vector<8x128xf32> to vector<8x128xbf16>
    %c0_28 = arith.constant 0 : index
    %c0_29 = arith.constant 0 : index
    %34 = vector.load %arg6[%c0_28, %c0_29] : memref<128x128xbf16, #tpu.memory_space<vmem>>, vector<128x128xbf16>
    %c0_30 = arith.constant 0 : index
    %c0_31 = arith.constant 0 : index
    %35 = vector.load %arg7[%c0_30, %c0_31] : memref<1x128xf32, #tpu.memory_space<vmem>>, vector<1x128xf32>
    %cst_32 = arith.constant dense<0.000000e+00> : vector<8x128xf32>
    %36 = tpu.matmul %33, %34, %cst_32 {dimension_numbers = #tpu.dot_dimension_numbers<[1], [0], [0], [1], [0, 0, 1, 1], [], []>} : vector<8x128xbf16>, vector<128x128xbf16>, vector<8x128xf32> -> vector<8x128xf32>
    %37 = vector.broadcast %35 : vector<1x128xf32> to vector<8x128xf32>
    %38 = arith.addf %36, %37 : vector<8x128xf32>
    %cst_33 = arith.constant 0.000000e+00 : f32
    %39 = vector.broadcast %cst_33 : f32 to vector<8x128xf32>
    %40 = arith.maximumf %38, %39 : vector<8x128xf32>
    %41 = arith.truncf %40 : vector<8x128xf32> to vector<8x128xbf16>
    %c0_34 = arith.constant 0 : index
    %c0_35 = arith.constant 0 : index
    %42 = vector.load %arg8[%c0_34, %c0_35] : memref<128x128xbf16, #tpu.memory_space<vmem>>, vector<128x128xbf16>
    %c0_36 = arith.constant 0 : index
    %c0_37 = arith.constant 0 : index
    %43 = vector.load %arg9[%c0_36, %c0_37] : memref<1x128xf32, #tpu.memory_space<vmem>>, vector<1x128xf32>
    %cst_38 = arith.constant dense<0.000000e+00> : vector<8x128xf32>
    %44 = tpu.matmul %41, %42, %cst_38 {dimension_numbers = #tpu.dot_dimension_numbers<[1], [0], [0], [1], [0, 0, 1, 1], [], []>} : vector<8x128xbf16>, vector<128x128xbf16>, vector<8x128xf32> -> vector<8x128xf32>
    %45 = vector.broadcast %43 : vector<1x128xf32> to vector<8x128xf32>
    %46 = arith.addf %44, %45 : vector<8x128xf32>
    %cst_39 = arith.constant 0.000000e+00 : f32
    %47 = vector.broadcast %cst_39 : f32 to vector<8x128xf32>
    %48 = arith.maximumf %46, %47 : vector<8x128xf32>
    %49 = arith.truncf %48 : vector<8x128xf32> to vector<8x128xbf16>
    %c0_40 = arith.constant 0 : index
    %c0_41 = arith.constant 0 : index
    %c0_42 = arith.constant 0 : index
    %50 = vector.load %arg10[%c0_40, %c0_41, %c0_42] : memref<2x128x128xbf16, #tpu.memory_space<vmem>>, vector<1x128x128xbf16>
    %51 = vector.shape_cast %50 : vector<1x128x128xbf16> to vector<128x128xbf16>
    %c0_43 = arith.constant 0 : index
    %c0_44 = arith.constant 0 : index
    %c0_45 = arith.constant 0 : index
    %52 = vector.load %arg11[%c0_43, %c0_44, %c0_45] : memref<2x1x128xf32, #tpu.memory_space<vmem>>, vector<1x1x128xf32>
    %53 = vector.shape_cast %52 : vector<1x1x128xf32> to vector<1x128xf32>
    %cst_46 = arith.constant dense<0.000000e+00> : vector<8x128xf32>
    %54 = tpu.matmul %49, %51, %cst_46 {dimension_numbers = #tpu.dot_dimension_numbers<[1], [0], [0], [1], [0, 0, 1, 1], [], []>} : vector<8x128xbf16>, vector<128x128xbf16>, vector<8x128xf32> -> vector<8x128xf32>
    %55 = vector.broadcast %53 : vector<1x128xf32> to vector<8x128xf32>
    %56 = arith.addf %54, %55 : vector<8x128xf32>
    %cst_47 = arith.constant 0.000000e+00 : f32
    %57 = vector.broadcast %cst_47 : f32 to vector<8x128xf32>
    %58 = arith.maximumf %56, %57 : vector<8x128xf32>
    %59 = arith.truncf %58 : vector<8x128xf32> to vector<8x128xbf16>
    %c1_48 = arith.constant 1 : index
    %c0_49 = arith.constant 0 : index
    %c0_50 = arith.constant 0 : index
    %60 = vector.load %arg10[%c1_48, %c0_49, %c0_50] : memref<2x128x128xbf16, #tpu.memory_space<vmem>>, vector<1x128x128xbf16>
    %61 = vector.shape_cast %60 : vector<1x128x128xbf16> to vector<128x128xbf16>
    %c1_51 = arith.constant 1 : index
    %c0_52 = arith.constant 0 : index
    %c0_53 = arith.constant 0 : index
    %62 = vector.load %arg11[%c1_51, %c0_52, %c0_53] : memref<2x1x128xf32, #tpu.memory_space<vmem>>, vector<1x1x128xf32>
    %63 = vector.shape_cast %62 : vector<1x1x128xf32> to vector<1x128xf32>
    %cst_54 = arith.constant dense<0.000000e+00> : vector<8x128xf32>
    %64 = tpu.matmul %59, %61, %cst_54 {dimension_numbers = #tpu.dot_dimension_numbers<[1], [0], [0], [1], [0, 0, 1, 1], [], []>} : vector<8x128xbf16>, vector<128x128xbf16>, vector<8x128xf32> -> vector<8x128xf32>
    %65 = vector.broadcast %63 : vector<1x128xf32> to vector<8x128xf32>
    %66 = arith.addf %64, %65 : vector<8x128xf32>
    %cst_55 = arith.constant 0.000000e+00 : f32
    %67 = vector.broadcast %cst_55 : f32 to vector<8x128xf32>
    %68 = arith.maximumf %66, %67 : vector<8x128xf32>
    %69 = arith.truncf %68 : vector<8x128xf32> to vector<8x128xbf16>
    %c0_56 = arith.constant 0 : index
    %c0_57 = arith.constant 0 : index
    %70 = vector.load %arg12[%c0_56, %c0_57] : memref<128x128xbf16, #tpu.memory_space<vmem>>, vector<128x128xbf16>
    %c0_58 = arith.constant 0 : index
    %c0_59 = arith.constant 0 : index
    %71 = vector.load %arg13[%c0_58, %c0_59] : memref<1x128xf32, #tpu.memory_space<vmem>>, vector<1x128xf32>
    %cst_60 = arith.constant dense<0.000000e+00> : vector<8x128xf32>
    %72 = tpu.matmul %69, %70, %cst_60 {dimension_numbers = #tpu.dot_dimension_numbers<[1], [0], [0], [1], [0, 0, 1, 1], [], []>} : vector<8x128xbf16>, vector<128x128xbf16>, vector<8x128xf32> -> vector<8x128xf32>
    %73 = vector.broadcast %71 : vector<1x128xf32> to vector<8x128xf32>
    %74 = arith.addf %72, %73 : vector<8x128xf32>
    %75 = arith.negf %74 : vector<8x128xf32>
    %76 = math.exp %75 : vector<8x128xf32>
    %cst_61 = arith.constant 1.000000e+00 : f32
    %77 = vector.broadcast %cst_61 : f32 to vector<8x128xf32>
    %78 = arith.addf %77, %76 : vector<8x128xf32>
    %79 = arith.divf %77, %78 : vector<8x128xf32>
    %80 = vector.extract_strided_slice %79 {offsets = [0, 0], sizes = [8, 64], strides = [1, 1]} : vector<8x128xf32> to vector<8x64xf32>
    %c0_62 = arith.constant 0 : index
    %c0_63 = arith.constant 0 : index
    %81 = vector.load %arg14[%c0_62, %c0_63] : memref<8x64xf32, #tpu.memory_space<vmem>>, vector<8x64xf32>
    tpu.vector_store %arg14[%c0_62, %c0_63], %80 {strides = array<i32>} : memref<8x64xf32, #tpu.memory_space<vmem>>, vector<8x64xf32>,
    return
  }
  func.func @transform_0(%arg0: i32) -> (i32, i32) {
    %c0_i32 = arith.constant 0 : i32
    %c0_i32_0 = arith.constant 0 : i32
    return %arg0, %c0_i32 : i32, i32
  }
  func.func @transform_1(%arg0: i32) -> (i32, i32) {
    %c0_i32 = arith.constant 0 : i32
    %c0_i32_0 = arith.constant 0 : i32
    %c0_i32_1 = arith.constant 0 : i32
    return %c0_i32, %c0_i32_0 : i32, i32
  }
  func.func @transform_2(%arg0: i32) -> (i32, i32) {
    %c0_i32 = arith.constant 0 : i32
    %c0_i32_0 = arith.constant 0 : i32
    %c0_i32_1 = arith.constant 0 : i32
    return %c0_i32, %c0_i32_0 : i32, i32
  }
  func.func @transform_3(%arg0: i32) -> (i32, i32, i32) {
    %c0_i32 = arith.constant 0 : i32
    %c0_i32_0 = arith.constant 0 : i32
    %c0_i32_1 = arith.constant 0 : i32
    %c0_i32_2 = arith.constant 0 : i32
    return %c0_i32, %c0_i32_0, %c0_i32_1 : i32, i32, i32
  }
  func.func @transform_4(%arg0: i32) -> (i32, i32, i32) {
    %c0_i32 = arith.constant 0 : i32
    %c0_i32_0 = arith.constant 0 : i32
    %c0_i32_1 = arith.constant 0 : i32
    %c0_i32_2 = arith.constant 0 : i32
    return %c0_i32, %c0_i32_0, %c0_i32_1 : i32, i32, i32
  }
  func.func @transform_5(%arg0: i32) -> (i32, i32) {
    %c0_i32 = arith.constant 0 : i32
    %c0_i32_0 = arith.constant 0 : i32
    %c0_i32_1 = arith.constant 0 : i32
    return %c0_i32, %c0_i32_0 : i32, i32
  }
  func.func @transform_6(%arg0: i32) -> (i32, i32) {
    %c0_i32 = arith.constant 0 : i32
    %c0_i32_0 = arith.constant 0 : i32
    %c0_i32_1 = arith.constant 0 : i32
    return %c0_i32, %c0_i32_0 : i32, i32
  }
  func.func @transform_7(%arg0: i32) -> (i32, i32) {
    %c0_i32 = arith.constant 0 : i32
    %c0_i32_0 = arith.constant 0 : i32
    %c0_i32_1 = arith.constant 0 : i32
    return %c0_i32, %c0_i32_0 : i32, i32
  }
  func.func @transform_8(%arg0: i32) -> (i32, i32) {
    %c0_i32 = arith.constant 0 : i32
    %c0_i32_0 = arith.constant 0 : i32
    %c0_i32_1 = arith.constant 0 : i32
    return %c0_i32, %c0_i32_0 : i32, i32
  }
  func.func @transform_9(%arg0: i32) -> (i32, i32, i32) {
    %c0_i32 = arith.constant 0 : i32
    %c0_i32_0 = arith.constant 0 : i32
    %c0_i32_1 = arith.constant 0 : i32
    %c0_i32_2 = arith.constant 0 : i32
    return %c0_i32, %c0_i32_0, %c0_i32_1 : i32, i32, i32
  }
  func.func @transform_10(%arg0: i32) -> (i32, i32, i32) {
    %c0_i32 = arith.constant 0 : i32
    %c0_i32_0 = arith.constant 0 : i32
    %c0_i32_1 = arith.constant 0 : i32
    %c0_i32_2 = arith.constant 0 : i32
    return %c0_i32, %c0_i32_0, %c0_i32_1 : i32, i32, i32
  }
  func.func @transform_11(%arg0: i32) -> (i32, i32) {
    %c0_i32 = arith.constant 0 : i32
    %c0_i32_0 = arith.constant 0 : i32
    %c0_i32_1 = arith.constant 0 : i32
    return %c0_i32, %c0_i32_0 : i32, i32
  }
  func.func @transform_12(%arg0: i32) -> (i32, i32) {
    %c0_i32 = arith.constant 0 : i32
    %c0_i32_0 = arith.constant 0 : i32
    %c0_i32_1 = arith.constant 0 : i32
    return %c0_i32, %c0_i32_0 : i32, i32
  }
  func.func @transform_13(%arg0: i32) -> (i32, i32) {
    %c0_i32 = arith.constant 0 : i32
    %c0_i32_0 = arith.constant 0 : i32
    return %arg0, %c0_i32 : i32, i32
  }
}

</mosaic_0001>

<bundles_post_ra>
// kernel: ae_forward.1
= control target key start
LH: loop header
LB: loop body
LE: loop exit
PB: predicated region body
PF: predicated region fallthrough
CT: control target
= control target key end

     0   :  { %18 = vsyncpa [#allocation4], 0  ;;  %s1961_s0 = inlined_call_operand.vmem [shape: f32[8,64], index: 0, kind: input, shape index: {}]   ;;  %s1962_s1 = inlined_call_operand.hbm [shape: bf16[128,128], index: 1, kind: input, shape index: {}]   ;;  %s1963_s2 = inlined_call_operand.vmem [shape: f32[1,128], index: 2, kind: input, shape index: {}]   ;;  %s1964_s3 = inlined_call_operand.hbm [shape: bf16[2,128,128], index: 3, kind: input, shape index: {}]   ;;  %s1965_s4 = inlined_call_operand.vmem [shape: f32[2,1,128], index: 4, kind: input, shape index: {}]   ;;  %s1966_s5 = inlined_call_operand.hbm [shape: bf16[128,128], index: 5, kind: input, shape index: {}]   ;;  %s1967_s6 = inlined_call_operand.vmem [shape: f32[1,128], index: 6, kind: input, shape index: {}]   ;;  %s1968_s7 = inlined_call_operand.hbm [shape: bf16[128,128], index: 7, kind: input, shape index: {}]   ;;  %s1969_s8 = inlined_call_operand.vmem [shape: f32[1,128], index: 8, kind: input, shape index: {}]   ;;  %s1970_s9 = inlined_call_operand.hbm [shape: bf16[2,128,128], index: 9, kind: input, shape index: {}]   ;;  %s1971_s10 = inlined_call_operand.hbm [shape: f32[2,1,128], index: 10, kind: input, shape index: {}]   ;;  %s1972_s11 = inlined_call_operand.hbm [shape: bf16[128,128], index: 11, kind: input, shape index: {}]   ;;  %s1973_s12 = inlined_call_operand.vmem [shape: f32[1,128], index: 12, kind: input, shape index: {}]   ;;  %s1974_s13 = inlined_call_operand.hbm [shape: f32[8,64], index: 13, kind: output, shape index: {}]  }
   0x1   :  { %19 = vsyncpa [#allocation7], 0 }
   0x2   :  { %20 = vsyncpa [#allocation10], 0 }
   0x3   :  { %21 = vsyncpa [#allocation13], 0 }
   0x4   :  { %22 = vsyncpa [#allocation5], 0  ;;  %s1652_s25 = smov [#allocation6]   ;;  %s1653_s27 = smov [#allocation9]  }
   0x5   :  { %s44_s26 = sshll.u32 %s1652_s25, 4  ;;  %s72_s28 = sshll.u32 %s1653_s27, 4  ;;  %s45_s26 = int_to_ptr.vmem [resolvable:$true] %s44_s26  ;;  %s1736_s28 = int_to_ptr.vmem [resolvable:$true] %s72_s28 }
   0x6   :  { %s1466_s14 = scalar_lea.hbm %s1964_s3, 2048 }
   0x7   :  { %p1467_p0 = scmp.ne.s32.totalorder %s1964_s3, %s1466_s14  ;;  %p1470_p1 = scmp.lt.u32.totalorder %s1466_s14, %s1964_s3 }
   0x9   :  { %p1472_p2 = pnand %p1470_p1, %p1467_p0 }
   0xb   :  { %1475 = shalt.err (!%p1472_p2)
}
   0xc   :  { %s1476_s19 = scalar_lea.vmem %s45_s26, 2048  ;;  %p1481_p4 = scmp.lt.s32.totalorder %s45_s26, %s45_s26 }
   0xd   :  { %p1477_p3 = scmp.ne.s32.totalorder %s45_s26, %s1476_s19  ;;  %p1482_p5 = scmp.lt.s32.totalorder %s1476_s19, %s1476_s19 }
   0xf   :  { %p1483_p6 = por %p1482_p5, %p1481_p4 }
  0x11   :  { %p1484_p7 = pnand %p1483_p6, %p1477_p3 }
  0x13   :  { %1487 = shalt.err (!%p1484_p7)
}
  0x14   :  { %s1654_s20 = smov 64   ;;  %s1655_s21 = smov 4  }
  0x15   :  { %50 = dma.hbm_to_vmem [thread:$0]  %s1964_s3, 2048, %s45_s26, [#allocation7], %s1654_s20, %s1654_s20, %s1655_s21  }
  0x16   :  { %s1488_s27 = scalar_lea.hbm %s1968_s7, 1024 }
  0x17   :  { %p1489_p8 = scmp.ne.s32.totalorder %s1968_s7, %s1488_s27  ;;  %p1492_p9 = scmp.lt.u32.totalorder %s1488_s27, %s1968_s7 }
  0x19   :  { %p1494_p10 = pnand %p1492_p9, %p1489_p8 }
  0x1b   :  { %1497 = shalt.err (!%p1494_p10)
}
  0x1c   :  { %s1498_s16 = scalar_lea.vmem %s1736_s28, 1024  ;;  %p1503_p12 = scmp.lt.s32.totalorder %s1736_s28, %s1736_s28 }
  0x1d   :  { %p1499_p11 = scmp.ne.s32.totalorder %s1736_s28, %s1498_s16  ;;  %p1504_p13 = scmp.lt.s32.totalorder %s1498_s16, %s1498_s16 }
  0x1f   :  { %p1505_p0 = por %p1504_p13, %p1503_p12 }
  0x21   :  { %p1506_p1 = pnand %p1505_p0, %p1499_p11 }
  0x23   :  { %1509 = shalt.err (!%p1506_p1)
}
  0x24   :  { %78 = dma.hbm_to_vmem [thread:$0]  %s1968_s7, 1024, %s1736_s28, [#allocation10], %s1654_s20, %s1654_s20, %s1655_s21  }
  0x25   :  { %s1656_s17 = smov [#allocation12]   ;;  %s1510_s23 = scalar_lea.hbm %s1971_s10, 32 }
  0x26   :  { %s98_s18 = sshll.u32 %s1656_s17, 4  ;;  %p1511_p2 = scmp.ne.s32.totalorder %s1971_s10, %s1510_s23  ;;  %s99_s18 = int_to_ptr.vmem [resolvable:$true] %s98_s18 }
  0x27   :  { %p1514_p3 = scmp.lt.u32.totalorder %s1510_s23, %s1971_s10 }
  0x29   :  { %p1516_p4 = pnand %p1514_p3, %p1511_p2 }
  0x2b   :  { %1519 = shalt.err (!%p1516_p4)
}
  0x2c   :  { %s1520_s30 = scalar_lea.vmem %s99_s18, 32  ;;  %p1525_p6 = scmp.lt.s32.totalorder %s99_s18, %s99_s18 }
  0x2d   :  { %p1521_p5 = scmp.ne.s32.totalorder %s99_s18, %s1520_s30  ;;  %p1526_p7 = scmp.lt.s32.totalorder %s1520_s30, %s1520_s30 }
  0x2f   :  { %p1527_p8 = por %p1526_p7, %p1525_p6 }
  0x31   :  { %p1528_p9 = pnand %p1527_p8, %p1521_p5 }
  0x33   :  { %1531 = shalt.err (!%p1528_p9)
}
  0x34   :  { %s1657_s7 = smov 16   ;;  %s1658_s28 = smov 1  }
  0x35   :  { %104 = dma.hbm_to_vmem [thread:$0]  %s1971_s10, 32, %s99_s18, [#allocation13], %s1657_s7, %s1657_s7, %s1658_s28  }
  0x36   :  { %s1659_s16 = smov [#allocation3]   ;;  %s1660_s26 = smov [#allocation8]  }
  0x37   :  { %s30_s3 = sshll.u32 %s1659_s16, 4  ;;  %s58_s17 = sshll.u32 %s1660_s26, 4  ;;  %s31_s3 = int_to_ptr.vmem [resolvable:$true] %s30_s3  ;;  %s59_s17 = int_to_ptr.vmem [resolvable:$true] %s58_s17 }
  0x38   :  { %s1532_s23 = scalar_lea.hbm %s1962_s1, 1024 }
  0x39   :  { %p1533_p10 = scmp.ne.s32.totalorder %s1962_s1, %s1532_s23  ;;  %p1536_p11 = scmp.lt.u32.totalorder %s1532_s23, %s1962_s1 }
  0x3b   :  { %p1538_p12 = pnand %p1536_p11, %p1533_p10 }
  0x3d   :  { %1541 = shalt.err (!%p1538_p12)
}
  0x3e   :  { %s1542_s10 = scalar_lea.vmem %s31_s3, 1024  ;;  %p1547_p0 = scmp.lt.s32.totalorder %s31_s3, %s31_s3 }
  0x3f   :  { %p1543_p13 = scmp.ne.s32.totalorder %s31_s3, %s1542_s10  ;;  %p1548_p1 = scmp.lt.s32.totalorder %s1542_s10, %s1542_s10 }
  0x41   :  { %p1549_p2 = por %p1548_p1, %p1547_p0 }
  0x43   :  { %p1550_p3 = pnand %p1549_p2, %p1543_p13 }
  0x45   :  { %1553 = shalt.err (!%p1550_p3)
}
  0x46   :  { %36 = dma.hbm_to_vmem [thread:$0]  %s1962_s1, 1024, %s31_s3, [#allocation4], %s1654_s20, %s1654_s20, %s1655_s21  }
  0x47   :  { %s1554_s14 = scalar_lea.hbm %s1966_s5, 1024 }
  0x48   :  { %p1555_p4 = scmp.ne.s32.totalorder %s1966_s5, %s1554_s14  ;;  %p1558_p5 = scmp.lt.u32.totalorder %s1554_s14, %s1966_s5 }
  0x4a   :  { %p1560_p6 = pnand %p1558_p5, %p1555_p4 }
  0x4c   :  { %1563 = shalt.err (!%p1560_p6)
}
  0x4d   :  { %s1564_s22 = scalar_lea.vmem %s59_s17, 1024  ;;  %p1569_p8 = scmp.lt.s32.totalorder %s59_s17, %s59_s17 }
  0x4e   :  { %p1565_p7 = scmp.ne.s32.totalorder %s59_s17, %s1564_s22  ;;  %p1570_p9 = scmp.lt.s32.totalorder %s1564_s22, %s1564_s22 }
  0x50   :  { %p1571_p10 = por %p1570_p9, %p1569_p8 }
  0x52   :  { %p1572_p11 = pnand %p1571_p10, %p1565_p7 }
  0x54   :  { %1575 = shalt.err (!%p1572_p11)
}
  0x55   :  { %64 = dma.hbm_to_vmem [thread:$0]  %s1966_s5, 1024, %s59_s17, [#allocation7], %s1654_s20, %s1654_s20, %s1655_s21  }
  0x56   :  { %s1661_s23 = smov [#allocation11]   ;;  %s1662_s25 = smov [#allocation14]  }
  0x57   :  { %s86_s24 = sshll.u32 %s1661_s23, 4  ;;  %s110_s27 = sshll.u32 %s1662_s25, 4  ;;  %s87_s24 = int_to_ptr.vmem [resolvable:$true] %s86_s24  ;;  %s111_s27 = int_to_ptr.vmem [resolvable:$true] %s110_s27 }
  0x58   :  { %s1576_s18 = scalar_lea.hbm %s1970_s9, 2048 }
  0x59   :  { %p1577_p12 = scmp.ne.s32.totalorder %s1970_s9, %s1576_s18  ;;  %p1580_p13 = scmp.lt.u32.totalorder %s1576_s18, %s1970_s9 }
  0x5b   :  { %p1582_p0 = pnand %p1580_p13, %p1577_p12 }
  0x5d   :  { %1585 = shalt.err (!%p1582_p0)
}
  0x5e   :  { %s1586_s5 = scalar_lea.vmem %s87_s24, 2048  ;;  %p1591_p2 = scmp.lt.s32.totalorder %s87_s24, %s87_s24 }
  0x5f   :  { %p1587_p1 = scmp.ne.s32.totalorder %s87_s24, %s1586_s5  ;;  %p1592_p3 = scmp.lt.s32.totalorder %s1586_s5, %s1586_s5 }
  0x61   :  { %p1593_p4 = por %p1592_p3, %p1591_p2 }
  0x63   :  { %p1594_p5 = pnand %p1593_p4, %p1587_p1 }
  0x65   :  { %1597 = shalt.err (!%p1594_p5)
}
  0x66   :  { %92 = dma.hbm_to_vmem [thread:$0]  %s1970_s9, 2048, %s87_s24, [#allocation10], %s1654_s20, %s1654_s20, %s1655_s21  }
  0x67   :  { %s1598_s19 = scalar_lea.hbm %s1972_s11, 1024 }
  0x68   :  { %p1599_p6 = scmp.ne.s32.totalorder %s1972_s11, %s1598_s19  ;;  %p1602_p7 = scmp.lt.u32.totalorder %s1598_s19, %s1972_s11 }
  0x6a   :  { %p1604_p8 = pnand %p1602_p7, %p1599_p6 }
  0x6c   :  { %1607 = shalt.err (!%p1604_p8)
}
  0x6d   :  { %s1608_s25 = scalar_lea.vmem %s111_s27, 1024  ;;  %p1613_p10 = scmp.lt.s32.totalorder %s111_s27, %s111_s27 }
  0x6e   :  { %p1609_p9 = scmp.ne.s32.totalorder %s111_s27, %s1608_s25  ;;  %p1614_p11 = scmp.lt.s32.totalorder %s1608_s25, %s1608_s25 }
  0x70   :  { %p1615_p12 = por %p1614_p11, %p1613_p10 }
  0x72   :  { %p1616_p13 = pnand %p1615_p12, %p1609_p9 }
  0x74   :  { %1619 = shalt.err (!%p1616_p13)
}
  0x75   :  { %116 = dma.hbm_to_vmem [thread:$0]  %s1972_s11, 1024, %s111_s27, [#allocation13], %s1654_s20, %s1654_s20, %s1655_s21  }
  0x76   :  { %1642 = dma.done.wait [#allocation4], 1024  }
  0x77   :  { %1643 = vsyncadd [#allocation4], 4294966272 }
  0x78   :  { %1644 = dma.done.wait [#allocation7], 3072  }
  0x79   :  { %1645 = vsyncadd [#allocation7], 4294964224 }
  0x7a   :  { %1646 = dma.done.wait [#allocation10], 3072  }
  0x7b   :  { %1647 = vsyncadd [#allocation10], 4294964224 }
  0x7c   :  { %1648 = dma.done.wait [#allocation13], 1056  }
  0x7d   :  { %1649 = vsyncadd [#allocation13], 4294966240  ;;  %v1663_v0 = vmov 0.0   ;;  %vm1664_vm0 = vmmov 0   ;;  %v1398_v1 = vld [vmem:[#allocation3] sm:$0xff]   ;;  %v1399_v2 = vld [vmem:[#allocation3 + $0x8] sm:$0xff]  }
  0x7e   :  { %1224 = vmatprep.subr.bf16.mxu0 %v1663_v0  ;;  %141 = vst [vmem:[#allocation2] sm:$0xff] %v1663_v0  ;;  %1240 = vmatprep.mubr.msk.bf16.mxu0 %vm1664_vm0, %v1663_v0  ;;  %v1400_v3 = vld [vmem:[#allocation3 + $0x10] sm:$0xff]   ;;  %vm143_vm1 = vcmask 523264   ;;  %v142_v4 = vld [vmem:[%s1961_s0] sm:$0xff]  ;;  %v1406_v5 = vld [vmem:[#allocation6] sm:$0xff]   ;;  %s1665_s28 = smov [#allocation15]  }
  0x7f   :  { %1244 = vmatprep.subr.bf16.mxu1 %v1663_v0  ;;  %1260 = vmatprep.mubr.msk.bf16.mxu1 %vm1664_vm0, %v1663_v0  ;;  %144 = vst.msk [vmem:[#allocation2] sm:$0xff] %vm143_vm1, %v142_v4  ;;  %v1401_v6 = vld [vmem:[#allocation3 + $0x18] sm:$0xff]   ;;  %v1407_v7 = vld [vmem:[#allocation6 + $0x8] sm:$0xff]   ;;  %v1402_v8 = vld [vmem:[#allocation3 + $0x20] sm:$0xff]   ;;  %s1066_s14 = sshll.u32 %s1665_s28, 4  ;;  %s1067_s14 = int_to_ptr.vmem [resolvable:$true] %s1066_s14 }
  0x80   :  { %1225 = vmatpush3.bf16.msra.mxu0 %v1398_v1  ;;  %1245 = vmatpush3.bf16.msra.mxu1 %v1406_v5  ;;  %v1408_v9 = vld [vmem:[#allocation6 + $0x10] sm:$0xff]   ;;  %v1403_v10 = vld [vmem:[#allocation3 + $0x28] sm:$0xff]   ;;  %v1409_v11 = vld [vmem:[#allocation6 + $0x18] sm:$0xff]   ;;  %s1620_s5 = scalar_lea.vmem %s1067_s14, 128  ;;  %p1625_p1 = scmp.lt.s32.totalorder %s1067_s14, %s1067_s14 }
  0x81   :  { %1226 = vmatprep.subr.bf16.mxu0 %v1663_v0  ;;  %1246 = vmatprep.subr.bf16.mxu1 %v1663_v0  ;;  %v1404_v12 = vld [vmem:[#allocation3 + $0x30] sm:$0xff]   ;;  %v1410_v13 = vld [vmem:[#allocation6 + $0x20] sm:$0xff]   ;;  %v1405_v14 = vld [vmem:[#allocation3 + $0x38] sm:$0xff]   ;;  %p1621_p0 = scmp.ne.s32.totalorder %s1067_s14, %s1620_s5  ;;  %p1626_p2 = scmp.lt.s32.totalorder %s1620_s5, %s1620_s5 }
  0x82   :  { %v1411_v16 = vld [vmem:[#allocation6 + $0x28] sm:$0xff]   ;;  %v1412_v18 = vld [vmem:[#allocation6 + $0x30] sm:$0xff]   ;;  %v1413_v19 = vld [vmem:[#allocation6 + $0x38] sm:$0xff]  }
  0x83   :  { %v1414_v20 = vld [vmem:[#allocation6 + $0x40] sm:$0xff]   ;;  %v1415_v21 = vld [vmem:[#allocation6 + $0x48] sm:$0xff]   ;;  %v1416_v22 = vld [vmem:[#allocation6 + $0x50] sm:$0xff]   ;;  %p1627_p3 = por %p1626_p2, %p1625_p1 }
  0x84   :  { %1227 = vmatpush3.bf16.msra.mxu0 %v1399_v2  ;;  %1247 = vmatpush3.bf16.msra.mxu1 %v1407_v7  ;;  %v1417_v23 = vld [vmem:[#allocation6 + $0x58] sm:$0xff]   ;;  %v1418_v24 = vld [vmem:[#allocation6 + $0x60] sm:$0xff]   ;;  %v1419_v25 = vld [vmem:[#allocation6 + $0x68] sm:$0xff]  }
  0x85   :  { %1228 = vmatprep.subr.bf16.mxu0 %v1663_v0  ;;  %1248 = vmatprep.subr.bf16.mxu1 %v1663_v0  ;;  %v1078_v26 = vld [vmem:[%s1963_s2] ss:$0 sm:$0xff]  ;;  %v1420_v34 = vld [vmem:[#allocation6 + $0x70] sm:$0xff]   ;;  %v1421_v35 = vld [vmem:[#allocation6 + $0x78] sm:$0xff]   ;;  %p1628_p4 = pnand %p1627_p3, %p1621_p0 }
  0x86   :  { %v145_v15 = vld [vmem:[#allocation2] sm:$0xff]  ;;  %v1422_v36 = vld [vmem:[#allocation8] sm:$0xff]   ;;  %v1423_v37 = vld [vmem:[#allocation8 + $0x8] sm:$0xff]  }
  0x87   :  { %v146_v17 = vpack.c.bf16 %v145_v15, %v145_v15  ;;  %v1424_v38 = vld [vmem:[#allocation8 + $0x10] sm:$0xff]   ;;  %v1425_v39 = vld [vmem:[#allocation8 + $0x18] sm:$0xff]   ;;  %v1426_v40 = vld [vmem:[#allocation8 + $0x20] sm:$0xff]  }
  0x88   :  { %1229 = vmatpush3.bf16.msra.mxu0 %v1400_v3  ;;  %1249 = vmatpush3.bf16.msra.mxu1 %v1408_v9  ;;  %v1427_v41 = vld [vmem:[#allocation8 + $0x28] sm:$0xff]   ;;  %v1428_v50 = vld [vmem:[#allocation8 + $0x30] sm:$0xff]   ;;  %v1429_v51 = vld [vmem:[#allocation8 + $0x38] sm:$0xff]  }
  0x89   :  { %1230 = vmatprep.subr.bf16.mxu0 %v1663_v0  ;;  %1250 = vmatprep.subr.bf16.mxu1 %v1663_v0  ;;  %v1087_v42 = vld [vmem:[%s1965_s4] ss:$0 sm:$0xff]  ;;  %v1430_v52 = vld [vmem:[#allocation9] sm:$0xff]   ;;  %v1432_v54 = vld [vmem:[#allocation9 + $0x10] sm:$0xff]  }
  0x8a   :  { %v1431_v53 = vld [vmem:[#allocation9 + $0x8] sm:$0xff]   ;;  %v1433_v55 = vld [vmem:[#allocation9 + $0x18] sm:$0xff]   ;;  %v1434_v56 = vld [vmem:[#allocation9 + $0x20] sm:$0xff]  }
  0x8b   :  { %v1435_v57 = vld [vmem:[#allocation9 + $0x28] sm:$0xff]   ;;  %v1436_v3 = vld [vmem:[#allocation9 + $0x30] sm:$0xff]   ;;  %v1437_v4 = vld [vmem:[#allocation9 + $0x38] sm:$0xff]  }
  0x8c   :  { %1231 = vmatpush3.bf16.msra.mxu0 %v1401_v6  ;;  %1251 = vmatpush3.bf16.msra.mxu1 %v1409_v11  ;;  %v1097_v58 = vld [vmem:[%s1965_s4 + $0x1] ss:$0 sm:$0xff]  ;;  %v1438_v5 = vld [vmem:[#allocation11] sm:$0xff]   ;;  %v1440_v7 = vld [vmem:[#allocation11 + $0x10] sm:$0xff]  }
  0x8d   :  { %1232 = vmatprep.subr.bf16.mxu0 %v1663_v0  ;;  %1252 = vmatprep.subr.bf16.mxu1 %v1663_v0  ;;  %v1439_v6 = vld [vmem:[#allocation11 + $0x8] sm:$0xff]   ;;  %v1442_v9 = vld [vmem:[#allocation11 + $0x20] sm:$0xff]  }
  0x8e   :  { %v1106_v11 = vld [vmem:[%s1967_s6] ss:$0 sm:$0xff] }
  0x90   :  { %1233 = vmatpush3.bf16.msra.mxu0 %v1402_v8  ;;  %1253 = vmatpush3.bf16.msra.mxu1 %v1410_v13  ;;  %v1441_v8 = vld [vmem:[#allocation11 + $0x18] sm:$0xff]  }
  0x91   :  { %1234 = vmatprep.subr.bf16.mxu0 %v1663_v0  ;;  %1254 = vmatprep.subr.bf16.mxu1 %v1663_v0 }
  0x94   :  { %1235 = vmatpush3.bf16.msra.mxu0 %v1403_v10  ;;  %1255 = vmatpush3.bf16.msra.mxu1 %v1411_v16  ;;  %v1443_v10 = vld [vmem:[#allocation11 + $0x28] sm:$0xff]  }
  0x95   :  { %1236 = vmatprep.subr.bf16.mxu0 %v1663_v0  ;;  %1256 = vmatprep.subr.bf16.mxu1 %v1663_v0 }
  0x98   :  { %1237 = vmatpush3.bf16.msra.mxu0 %v1404_v12  ;;  %1257 = vmatpush3.bf16.msra.mxu1 %v1412_v18 }
  0x99   :  { %1238 = vmatprep.subr.bf16.mxu0 %v1663_v0  ;;  %1258 = vmatprep.subr.bf16.mxu1 %v1663_v0 }
  0x9c   :  { %1239 = vmatpush3.bf16.msra.mxu0 %v1405_v14  ;;  %1259 = vmatpush3.bf16.msra.mxu1 %v1413_v19  ;;  %v1444_v19 = vld [vmem:[#allocation11 + $0x30] sm:$0xff]  }
  0x9d   :  { %1264 = vmatprep.subr.bf16.mxu0 %v1663_v0  ;;  %1284 = vmatprep.subr.bf16.mxu1 %v1663_v0 }
  0x9f   :  { %1241 = vmatmul.mubr.bf16.vlgmr.msra.gmra.mrb[0].mxu0 %v146_v17 }
  0xa0   :  { %1280 = vmatprep.mubr.msk.bf16.mxu0 %vm1664_vm0, %v1663_v0  ;;  %1265 = vmatpush3.bf16.msra.mxu0 %v1414_v20  ;;  %v1445_v20 = vld [vmem:[#allocation11 + $0x38] sm:$0xff]  }
  0xa1   :  { %1266 = vmatprep.subr.bf16.mxu0 %v1663_v0 }
  0xa4   :  { %1267 = vmatpush3.bf16.msra.mxu0 %v1415_v21  ;;  %v1446_v21 = vld [vmem:[#allocation11 + $0x40] sm:$0xff]  }
  0xa5   :  { %1268 = vmatprep.subr.bf16.mxu0 %v1663_v0 }
  0xa8   :  { %1269 = vmatpush3.bf16.msra.mxu0 %v1416_v22  ;;  %v1447_v22 = vld [vmem:[#allocation11 + $0x48] sm:$0xff]  }
  0xa9   :  { %1270 = vmatprep.subr.bf16.mxu0 %v1663_v0 }
  0xac   :  { %1271 = vmatpush3.bf16.msra.mxu0 %v1417_v23  ;;  %v1448_v23 = vld [vmem:[#allocation11 + $0x50] sm:$0xff]  }
  0xad   :  { %1272 = vmatprep.subr.bf16.mxu0 %v1663_v0 }
  0xb0   :  { %1273 = vmatpush3.bf16.msra.mxu0 %v1418_v24  ;;  %v1449_v24 = vld [vmem:[#allocation11 + $0x58] sm:$0xff]  }
  0xb1   :  { %1274 = vmatprep.subr.bf16.mxu0 %v1663_v0 }
  0xb4   :  { %1275 = vmatpush3.bf16.msra.mxu0 %v1419_v25  ;;  %v1450_v25 = vld [vmem:[#allocation11 + $0x60] sm:$0xff]  }
  0xb5   :  { %1276 = vmatprep.subr.bf16.mxu0 %v1663_v0 }
  0xb8   :  { %1277 = vmatpush3.bf16.msra.mxu0 %v1420_v34 }
  0xb9   :  { %1278 = vmatprep.subr.bf16.mxu0 %v1663_v0 }
  0xbc   :  { %1279 = vmatpush3.bf16.msra.mxu0 %v1421_v35  ;;  %v1452_v35 = vld [vmem:[#allocation11 + $0x70] sm:$0xff]  }
  0xbd   :  { %1304 = vmatprep.subr.bf16.mxu0 %v1663_v0 }
 0x172   :  { %v252_v27 = vpop.f32.mrb[0].mxu0 }
 0x173   :  { %v253_v28 = vadd.f32 %v1078_v26, %v252_v27  ;;  %v1242_v29 = vpop.f32.mrb[1].mxu0  ;;  %v1451_v26 = vld [vmem:[#allocation11 + $0x68] sm:$0xff]  }
 0x174   :  { %v255_v30 = vpop.f32.mrb[2].mxu0  ;;  %v1115_v27 = vld [vmem:[%s1969_s8] ss:$0 sm:$0xff] }
 0x175   :  { %v258_v31 = vmax.f32 %v253_v28, 0.0  ;;  %v1243_v32 = vpop.f32.mrb[3].mxu0 }
 0x177   :  { %v259_v33 = vpack.c.bf16 %v258_v31, %v258_v31 }
 0x179   :  { %1261 = vmatmul.mubr.bf16.vlgmr.msra.gmra.mrb[0].mxu1 %v259_v33 }
 0x17a   :  { %1300 = vmatprep.mubr.msk.bf16.mxu1 %vm1664_vm0, %v1663_v0  ;;  %1285 = vmatpush3.bf16.msra.mxu1 %v1422_v36  ;;  %v1453_v36 = vld [vmem:[#allocation11 + $0x78] sm:$0xff]  }
 0x17b   :  { %1286 = vmatprep.subr.bf16.mxu1 %v1663_v0 }
 0x17e   :  { %1287 = vmatpush3.bf16.msra.mxu1 %v1423_v37  ;;  %v1454_v37 = vld [vmem:[#allocation14] sm:$0xff]  }
 0x17f   :  { %1288 = vmatprep.subr.bf16.mxu1 %v1663_v0 }
 0x182   :  { %1289 = vmatpush3.bf16.msra.mxu1 %v1424_v38  ;;  %v1455_v38 = vld [vmem:[#allocation14 + $0x8] sm:$0xff]  }
 0x183   :  { %1290 = vmatprep.subr.bf16.mxu1 %v1663_v0 }
 0x186   :  { %1291 = vmatpush3.bf16.msra.mxu1 %v1425_v39  ;;  %v1456_v39 = vld [vmem:[#allocation14 + $0x10] sm:$0xff]  }
 0x187   :  { %1292 = vmatprep.subr.bf16.mxu1 %v1663_v0 }
 0x18a   :  { %1293 = vmatpush3.bf16.msra.mxu1 %v1426_v40  ;;  %v1457_v40 = vld [vmem:[#allocation14 + $0x18] sm:$0xff]  }
 0x18b   :  { %1294 = vmatprep.subr.bf16.mxu1 %v1663_v0 }
 0x18e   :  { %1295 = vmatpush3.bf16.msra.mxu1 %v1427_v41  ;;  %v1458_v41 = vld [vmem:[#allocation14 + $0x20] sm:$0xff]  }
 0x18f   :  { %1296 = vmatprep.subr.bf16.mxu1 %v1663_v0 }
 0x192   :  { %1297 = vmatpush3.bf16.msra.mxu1 %v1428_v50 }
 0x193   :  { %1298 = vmatprep.subr.bf16.mxu1 %v1663_v0 }
 0x196   :  { %1299 = vmatpush3.bf16.msra.mxu1 %v1429_v51  ;;  %v1460_v51 = vld [vmem:[#allocation14 + $0x30] sm:$0xff]  }
 0x197   :  { %1324 = vmatprep.subr.bf16.mxu1 %v1663_v0 }
 0x24c   :  { %v365_v43 = vpop.f32.mrb[0].mxu1 }
 0x24d   :  { %v366_v44 = vadd.f32 %v1087_v42, %v365_v43  ;;  %v1262_v45 = vpop.f32.mrb[1].mxu1  ;;  %v1459_v42 = vld [vmem:[#allocation14 + $0x28] sm:$0xff]   ;;  %v1124_v43 = vld [vmem:[#allocation12] ss:$0 sm:$0xff] }
 0x24e   :  { %v368_v46 = vpop.f32.mrb[2].mxu1 }
 0x24f   :  { %v371_v47 = vmax.f32 %v366_v44, 0.0  ;;  %v1263_v48 = vpop.f32.mrb[3].mxu1 }
 0x251   :  { %v372_v49 = vpack.c.bf16 %v371_v47, %v371_v47 }
 0x253   :  { %1281 = vmatmul.mubr.bf16.vlgmr.msra.gmra.mrb[4].mxu0 %v372_v49 }
 0x254   :  { %1320 = vmatprep.mubr.msk.bf16.mxu0 %vm1664_vm0, %v1663_v0  ;;  %1305 = vmatpush3.bf16.msra.mxu0 %v1430_v52  ;;  %v1461_v52 = vld [vmem:[#allocation14 + $0x38] sm:$0xff]  }
 0x255   :  { %1306 = vmatprep.subr.bf16.mxu0 %v1663_v0 }
 0x258   :  { %1307 = vmatpush3.bf16.msra.mxu0 %v1431_v53  ;;  %v1133_v53 = vld [vmem:[#allocation12 + $0x1] ss:$0 sm:$0xff] }
 0x259   :  { %1308 = vmatprep.subr.bf16.mxu0 %v1663_v0 }
 0x25c   :  { %1309 = vmatpush3.bf16.msra.mxu0 %v1432_v54 }
 0x25d   :  { %1310 = vmatprep.subr.bf16.mxu0 %v1663_v0 }
 0x260   :  { %1311 = vmatpush3.bf16.msra.mxu0 %v1433_v55 }
 0x261   :  { %1312 = vmatprep.subr.bf16.mxu0 %v1663_v0 }
 0x264   :  { %1313 = vmatpush3.bf16.msra.mxu0 %v1434_v56 }
 0x265   :  { %1314 = vmatprep.subr.bf16.mxu0 %v1663_v0 }
 0x268   :  { %1315 = vmatpush3.bf16.msra.mxu0 %v1435_v57 }
 0x269   :  { %1316 = vmatprep.subr.bf16.mxu0 %v1663_v0 }
 0x26c   :  { %1317 = vmatpush3.bf16.msra.mxu0 %v1436_v3 }
 0x26d   :  { %1318 = vmatprep.subr.bf16.mxu0 %v1663_v0 }
 0x270   :  { %1319 = vmatpush3.bf16.msra.mxu0 %v1437_v4 }
 0x271   :  { %1344 = vmatprep.subr.bf16.mxu0 %v1663_v0 }
 0x326   :  { %v480_v59 = vpop.f32.mrb[4].mxu0 }
 0x327   :  { %v481_v60 = vadd.f32 %v1097_v58, %v480_v59  ;;  %v1282_v61 = vpop.f32.mrb[5].mxu0 }
 0x328   :  { %v483_v62 = vpop.f32.mrb[6].mxu0  ;;  %v1142_v61 = vld [vmem:[%s1973_s12] ss:$0 sm:$0xff] }
 0x329   :  { %v486_v63 = vmax.f32 %v481_v60, 0.0  ;;  %v1283_v1 = vpop.f32.mrb[7].mxu0 }
 0x32b   :  { %v487_v2 = vpack.c.bf16 %v486_v63, %v486_v63 }
 0x32d   :  { %1301 = vmatmul.mubr.bf16.vlgmr.msra.gmra.mrb[4].mxu1 %v487_v2 }
 0x32e   :  { %1340 = vmatprep.mubr.msk.bf16.mxu1 %vm1664_vm0, %v1663_v0  ;;  %1325 = vmatpush3.bf16.msra.mxu1 %v1438_v5 }
 0x32f   :  { %1326 = vmatprep.subr.bf16.mxu1 %v1663_v0 }
 0x332   :  { %1327 = vmatpush3.bf16.msra.mxu1 %v1439_v6 }
 0x333   :  { %1328 = vmatprep.subr.bf16.mxu1 %v1663_v0 }
 0x336   :  { %1329 = vmatpush3.bf16.msra.mxu1 %v1440_v7 }
 0x337   :  { %1330 = vmatprep.subr.bf16.mxu1 %v1663_v0 }
 0x33a   :  { %1331 = vmatpush3.bf16.msra.mxu1 %v1441_v8 }
 0x33b   :  { %1332 = vmatprep.subr.bf16.mxu1 %v1663_v0 }
 0x33e   :  { %1333 = vmatpush3.bf16.msra.mxu1 %v1442_v9 }
 0x33f   :  { %1334 = vmatprep.subr.bf16.mxu1 %v1663_v0 }
 0x342   :  { %1335 = vmatpush3.bf16.msra.mxu1 %v1443_v10 }
 0x343   :  { %1336 = vmatprep.subr.bf16.mxu1 %v1663_v0 }
 0x346   :  { %1337 = vmatpush3.bf16.msra.mxu1 %v1444_v19 }
 0x347   :  { %1338 = vmatprep.subr.bf16.mxu1 %v1663_v0 }
 0x34a   :  { %1339 = vmatpush3.bf16.msra.mxu1 %v1445_v20 }
 0x34b   :  { %1364 = vmatprep.subr.bf16.mxu1 %v1663_v0 }
 0x400   :  { %v593_v12 = vpop.f32.mrb[4].mxu1 }
 0x401   :  { %v594_v13 = vadd.f32 %v1106_v11, %v593_v12  ;;  %v1302_v14 = vpop.f32.mrb[5].mxu1 }
 0x402   :  { %v596_v15 = vpop.f32.mrb[6].mxu1 }
 0x403   :  { %v599_v16 = vmax.f32 %v594_v13, 0.0  ;;  %v1303_v17 = vpop.f32.mrb[7].mxu1 }
 0x405   :  { %v600_v18 = vpack.c.bf16 %v599_v16, %v599_v16 }
 0x407   :  { %1321 = vmatmul.mubr.bf16.vlgmr.msra.gmra.mrb[8].mxu0 %v600_v18 }
 0x408   :  { %1360 = vmatprep.mubr.msk.bf16.mxu0 %vm1664_vm0, %v1663_v0  ;;  %1345 = vmatpush3.bf16.msra.mxu0 %v1446_v21 }
 0x409   :  { %1346 = vmatprep.subr.bf16.mxu0 %v1663_v0 }
 0x40c   :  { %1347 = vmatpush3.bf16.msra.mxu0 %v1447_v22 }
 0x40d   :  { %1348 = vmatprep.subr.bf16.mxu0 %v1663_v0 }
 0x410   :  { %1349 = vmatpush3.bf16.msra.mxu0 %v1448_v23 }
 0x411   :  { %1350 = vmatprep.subr.bf16.mxu0 %v1663_v0 }
 0x414   :  { %1351 = vmatpush3.bf16.msra.mxu0 %v1449_v24 }
 0x415   :  { %1352 = vmatprep.subr.bf16.mxu0 %v1663_v0 }
 0x418   :  { %1353 = vmatpush3.bf16.msra.mxu0 %v1450_v25 }
 0x419   :  { %1354 = vmatprep.subr.bf16.mxu0 %v1663_v0 }
 0x41c   :  { %1355 = vmatpush3.bf16.msra.mxu0 %v1451_v26 }
 0x41d   :  { %1356 = vmatprep.subr.bf16.mxu0 %v1663_v0 }
 0x420   :  { %1357 = vmatpush3.bf16.msra.mxu0 %v1452_v35 }
 0x421   :  { %1358 = vmatprep.subr.bf16.mxu0 %v1663_v0 }
 0x424   :  { %1359 = vmatpush3.bf16.msra.mxu0 %v1453_v36 }
 0x4da   :  { %v706_v28 = vpop.f32.mrb[8].mxu0 }
 0x4db   :  { %v707_v29 = vadd.f32 %v1115_v27, %v706_v28  ;;  %v1322_v30 = vpop.f32.mrb[9].mxu0 }
 0x4dc   :  { %v709_v31 = vpop.f32.mrb[10].mxu0 }
 0x4dd   :  { %v712_v32 = vmax.f32 %v707_v29, 0.0  ;;  %v1323_v33 = vpop.f32.mrb[11].mxu0 }
 0x4df   :  { %v713_v34 = vpack.c.bf16 %v712_v32, %v712_v32 }
 0x4e1   :  { %1341 = vmatmul.mubr.bf16.vlgmr.msra.gmra.mrb[8].mxu1 %v713_v34 }
 0x4e2   :  { %1380 = vmatprep.mubr.msk.bf16.mxu1 %vm1664_vm0, %v1663_v0  ;;  %1365 = vmatpush3.bf16.msra.mxu1 %v1454_v37 }
 0x4e3   :  { %1366 = vmatprep.subr.bf16.mxu1 %v1663_v0 }
 0x4e6   :  { %1367 = vmatpush3.bf16.msra.mxu1 %v1455_v38 }
 0x4e7   :  { %1368 = vmatprep.subr.bf16.mxu1 %v1663_v0 }
 0x4ea   :  { %1369 = vmatpush3.bf16.msra.mxu1 %v1456_v39 }
 0x4eb   :  { %1370 = vmatprep.subr.bf16.mxu1 %v1663_v0 }
 0x4ee   :  { %1371 = vmatpush3.bf16.msra.mxu1 %v1457_v40 }
 0x4ef   :  { %1372 = vmatprep.subr.bf16.mxu1 %v1663_v0 }
 0x4f2   :  { %1373 = vmatpush3.bf16.msra.mxu1 %v1458_v41 }
 0x4f3   :  { %1374 = vmatprep.subr.bf16.mxu1 %v1663_v0 }
 0x4f6   :  { %1375 = vmatpush3.bf16.msra.mxu1 %v1459_v42 }
 0x4f7   :  { %1376 = vmatprep.subr.bf16.mxu1 %v1663_v0 }
 0x4fa   :  { %1377 = vmatpush3.bf16.msra.mxu1 %v1460_v51 }
 0x4fb   :  { %1378 = vmatprep.subr.bf16.mxu1 %v1663_v0 }
 0x4fe   :  { %1379 = vmatpush3.bf16.msra.mxu1 %v1461_v52 }
 0x5b4   :  { %v819_v44 = vpop.f32.mrb[8].mxu1 }
 0x5b5   :  { %v820_v45 = vadd.f32 %v1124_v43, %v819_v44  ;;  %v1342_v46 = vpop.f32.mrb[9].mxu1 }
 0x5b6   :  { %v822_v47 = vpop.f32.mrb[10].mxu1 }
 0x5b7   :  { %v825_v48 = vmax.f32 %v820_v45, 0.0  ;;  %v1343_v49 = vpop.f32.mrb[11].mxu1 }
 0x5b9   :  { %v826_v50 = vpack.c.bf16 %v825_v48, %v825_v48 }
 0x5bb   :  { %1361 = vmatmul.mubr.bf16.vlgmr.msra.gmra.mrb[12].mxu0 %v826_v50 }
 0x68e   :  { %v934_v54 = vpop.f32.mrb[12].mxu0 }
 0x68f   :  { %v935_v55 = vadd.f32 %v1133_v53, %v934_v54  ;;  %v1362_v56 = vpop.f32.mrb[13].mxu0 }
 0x690   :  { %v937_v57 = vpop.f32.mrb[14].mxu0 }
 0x691   :  { %v940_v58 = vmax.f32 %v935_v55, 0.0  ;;  %v1363_v59 = vpop.f32.mrb[15].mxu0 }
 0x693   :  { %v941_v60 = vpack.c.bf16 %v940_v58, %v940_v58 }
 0x695   :  { %1381 = vmatmul.mubr.bf16.vlgmr.msra.gmra.mrb[12].mxu1 %v941_v60 }
 0x768   :  { %v1047_v62 = vpop.f32.mrb[12].mxu1 }
 0x769   :  { %v1048_v63 = vadd.f32 %v1142_v61, %v1047_v62  ;;  %v1382_v1 = vpop.f32.mrb[13].mxu1 }
 0x76a   :  { %v1050_v2 = vpop.f32.mrb[14].mxu1 }
 0x76b   :  { %v1151_v0 = vmul.f32 -1.442695, %v1048_v63  ;;  %v1383_v3 = vpop.f32.mrb[15].mxu1 }
 0x76d   :  { %1462 = vpow2.f32 %v1151_v0 }
 0x777   :  { %v1463_v4 = vpop.eup %1462 }
 0x778   :  { %v1056_v5 = vadd.f32 1.0, %v1463_v4 }
 0x77a   :  { %1464 = vrcp.f32 %v1056_v5 }
 0x784   :  { %v1465_v6 = vpop.eup %1464 }
 0x785   :  { %1059 = vst.msk [vmem:[#allocation15] sm:$0xff] %vm143_vm1, %v1465_v6 }
 0x786   :  { %1631 = shalt.err (!%p1628_p4)
}
 0x787   :  { %s1632_s15 = scalar_lea.hbm %s1974_s13, 128 }
 0x788   :  { %p1633_p5 = scmp.ne.s32.totalorder %s1974_s13, %s1632_s15  ;;  %p1636_p6 = scmp.lt.u32.totalorder %s1632_s15, %s1974_s13 }
 0x78a   :  { %p1638_p7 = pnand %p1636_p6, %p1633_p5 }
 0x78c   :  { %1641 = shalt.err (!%p1638_p7)
}
 0x78d   :  { %1069 = dma.vmem_to_hbm [thread:$0]  %s1067_s14, 128, %s1974_s13, [#allocation5]  }
 0x78e   :  { %1650 = dma.done.wait [#allocation5], 128  }
 0x78f   :  { %1651 = vsyncadd [#allocation5], 4294967168 }
 0x790   :  { %1073 = vsyncpa [#allocation4], 1 }
 0x791   :  { %1074 = vsyncpa [#allocation7], 1 }
 0x792   :  { %1075 = vsyncpa [#allocation10], 1 }
 0x793   :  { %1076 = vsyncpa [#allocation13], 1 }
 0x794   :  { %1077 = vsyncpa [#allocation5], 1 }

</bundles_post_ra>
